<compile_context>
chip_gen: v5e
topology: v5e:2x2
jax: 0.10.0
libtpu: 0.0.40
codegen_flags: <defaults>
</compile_context>

<pallas_src>
import jax
import jax.numpy as jnp
from jax.experimental import pallas as pl
from jax.experimental.pallas import tpu as pltpu

_LANE = 128
_NEG_INF = jnp.float32(-1e30)  # bias for padded logit columns -> exp() == 0
_H1, _H2 = 512, 256


def _round_up(x, m):
    return (x + m - 1) // m * m


def mlp_kernel(x_ref, w1_ref, b1_ref, w2_ref, b2_ref, w3_ref, b3_ref, o_ref):
    # x arrives as f32 (no extra HBM pass in the wrapper); cast to bf16 right
    # before the MXU.  Accumulate in f32, bias-add in f32, then fuse ReLU with
    # the bf16 downcast (one packed VPU op on v6e/v7x).
    x = x_ref[...].astype(jnp.bfloat16)

    h1 = jnp.dot(x, w1_ref[...], preferred_element_type=jnp.float32) + b1_ref[...]
    h1 = jnp.maximum(h1.astype(jnp.bfloat16), 0)

    h2 = jnp.dot(h1, w2_ref[...], preferred_element_type=jnp.float32) + b2_ref[...]
    h2 = jnp.maximum(h2.astype(jnp.bfloat16), 0)

    logits = jnp.dot(h2, w3_ref[...], preferred_element_type=jnp.float32) + b3_ref[...]

    # Softmax over dim=1 (lane axis), numerically stabilized.  Padded logit
    # columns carry a -1e30 bias so exp() underflows to exactly 0 there.
    m = jnp.max(logits, axis=1, keepdims=True)
    e = jnp.exp(logits - m)
    denom = jnp.sum(e, axis=1, keepdims=True)
    # Exact division (not approx reciprocal) so every row sums to 1 to f32 precision.
    o_ref[...] = (e / denom).astype(o_ref.dtype)


def prepare_params(params):
    """One-time weight preparation, hoisted out of the forward hot path:
    bf16 casts of the matmul weights and lane-padding of fc3 to 128 columns."""
    w1, b1 = params["w1"], params["b1"]
    w2, b2 = params["w2"], params["b2"]
    w3, b3 = params["w3"], params["b3"]
    out_size = w3.shape[1]
    n_pad = max(_LANE, _round_up(out_size, _LANE))
    w3p = jnp.zeros((w3.shape[0], n_pad), jnp.bfloat16).at[:, :out_size].set(
        w3.astype(jnp.bfloat16))
    b3p = jnp.full((1, n_pad), _NEG_INF, jnp.float32).at[:, :out_size].set(
        b3.reshape(1, -1).astype(jnp.float32))
    return {
        "w1": w1.astype(jnp.bfloat16), "b1": b1.reshape(1, -1).astype(jnp.float32),
        "w2": w2.astype(jnp.bfloat16), "b2": b2.reshape(1, -1).astype(jnp.float32),
        "w3": w3p, "b3": b3p, "out_size": out_size,
    }


def fully_connected_classifier(x, prepared):
    """x: [B, input_size] float32. prepared: output of prepare_params()."""
    w1b, b1f = prepared["w1"], prepared["b1"]
    w2b, b2f = prepared["w2"], prepared["b2"]
    w3p, b3p = prepared["w3"], prepared["b3"]
    out_size = prepared["out_size"]

    B, K = x.shape
    N_pad = w3p.shape[1]

    # Pad the batch only up to the f32 sublane quantum (8 rows); any further
    # edge blocks are handled by Pallas read/write masking (no full pad pass).
    B_rows = _round_up(max(B, 1), 8)
    if B_rows != B:
        x = jnp.pad(x, ((0, B_rows - B), (0, 0)))

    # Batch tile: single tile for small batches; for large batches the largest
    # tile (<=1024) that keeps the grid length >= 2 so v7x megacore splits the
    # 'parallel' axis, amortizing the ~0.35us/step grid overhead.
    if B_rows <= 512:
        TB = B_rows
    else:
        TB = min(1024, _round_up(pl.cdiv(B_rows, 2), 256))

    weight_bytes = ((w1b.size + w2b.size + w3p.size) * 2
                    + (b1f.size + b2f.size + b3p.size) * 4)

    def vmem_est(tb):
        # x + out double buffers (f32) + single-buffered resident weights.
        return 2 * tb * K * 4 + 2 * tb * N_pad * 4 + weight_bytes

    while TB > 256 and vmem_est(TB) > (40 << 20):   # stay well under v7x's 64 MiB
        TB = max(256, _round_up(TB // 2, 256))
    vmem_limit = int(min(max(2 * vmem_est(TB), 16 << 20), 56 << 20))

    grid = (pl.cdiv(B_rows, TB),)

    flops = 2 * B_rows * (K * _H1 + _H1 * _H2 + _H2 * N_pad)
    bytes_accessed = B_rows * K * 4 + weight_bytes + B_rows * N_pad * 4
    cost = pl.CostEstimate(flops=flops, transcendentals=B_rows * N_pad,
                           bytes_accessed=bytes_accessed)

    # Weights/biases stay VMEM-resident across grid steps; single-buffered
    # since their block index never changes (double-buffering buys nothing).
    resident = lambda shape: pl.BlockSpec(shape, lambda i: (0, 0),
                                          pipeline_mode=pl.Buffered(1))

    out = pl.pallas_call(
        mlp_kernel,
        out_shape=jax.ShapeDtypeStruct((B_rows, N_pad), jnp.float32),
        grid=grid,
        in_specs=[
            pl.BlockSpec((TB, K), lambda i: (i, 0)),   # x: tiled over batch
            resident(w1b.shape), resident(b1f.shape),
            resident(w2b.shape), resident(b2f.shape),
            resident(w3p.shape), resident(b3p.shape),
        ],
        out_specs=pl.BlockSpec((TB, N_pad), lambda i: (i, 0)),
        compiler_params=pltpu.CompilerParams(
            dimension_semantics=("parallel",),          # megacore on v7x
            vmem_limit_bytes=vmem_limit,
        ),
        cost_estimate=cost,
    )(x, w1b, b1f, w2b, b2f, w3p, b3p)

    # TODO(synk): skip this slice if the consumer can use the lane-padded layout.
    return out[:B, :out_size]


def init_params(key, input_size, output_size):
    """PyTorch nn.Linear default init: U(-1/sqrt(fan_in), 1/sqrt(fan_in))."""
    def linear(key, fan_in, fan_out):
        kw, kb = jax.random.split(key)
        bound = 1.0 / jnp.sqrt(fan_in)
        # store weight as [in, out] (transposed vs PyTorch's [out, in])
        w = jax.random.uniform(kw, (fan_in, fan_out), jnp.float32, -bound, bound)
        b = jax.random.uniform(kb, (1, fan_out), jnp.float32, -bound, bound)
        return w, b

    k1, k2, k3 = jax.random.split(key, 3)
    w1, b1 = linear(k1, input_size, _H1)
    w2, b2 = linear(k2, _H1, _H2)
    w3, b3 = linear(k3, _H2, output_size)
    return {"w1": w1, "b1": b1, "w2": w2, "b2": b2, "w3": w3, "b3": b3}


def _reference(x, params):
    """Plain-JAX f32 reference of the PyTorch forward pass."""
    h1 = jnp.maximum(x @ params["w1"] + params["b1"], 0.0)
    h2 = jnp.maximum(h1 @ params["w2"] + params["b2"], 0.0)
    logits = h2 @ params["w3"] + params["b3"]
    return jax.nn.softmax(logits, axis=1)


if __name__ == "__main__":
    key = jax.random.PRNGKey(0)
    kx, kp = jax.random.split(key)

    batch = 8
    input_size = 128
    output_size = 16

    x = jax.random.normal(kx, (batch, input_size), jnp.float32)
    params = init_params(kp, input_size, output_size)
    prepared = prepare_params(params)       # one-time weight prep (cached)

    out = fully_connected_classifier(x, prepared)
    out = jax.block_until_ready(out)

    assert out.shape == (batch, output_size)
    # rows sum to 1 (exact division in the kernel -> f32-precision accurate)
    row_sums = jnp.sum(out, axis=1)
    assert jnp.allclose(row_sums, 1.0, atol=1e-3), float(jnp.max(jnp.abs(row_sums - 1.0)))
    # matches the f32 reference within bf16-matmul tolerance
    ref = _reference(x, params)
    assert jnp.allclose(out, ref, atol=2e-2), float(jnp.max(jnp.abs(out - ref)))

    print("KERNEL_OK")
</pallas_src>

<mosaic_0001>
module attributes {stable_mosaic.version = 11 : i64} {
  func.func @mlp_kernel(%arg0: i32, %arg1: memref<8x128xf32, #tpu.memory_space<vmem>>, %arg2: memref<128x512xbf16, #tpu.memory_space<vmem>>, %arg3: memref<1x512xf32, #tpu.memory_space<vmem>>, %arg4: memref<512x256xbf16, #tpu.memory_space<vmem>>, %arg5: memref<1x256xf32, #tpu.memory_space<vmem>>, %arg6: memref<256x128xbf16, #tpu.memory_space<vmem>>, %arg7: memref<1x128xf32, #tpu.memory_space<vmem>>, %arg8: memref<8x128xf32, #tpu.memory_space<vmem>>) attributes {dimension_semantics = [#tpu.dimension_semantics<parallel>], iteration_bounds = array<i64: 1>, scalar_prefetch = 0 : i64, scratch_operands = 0 : i64, tpu.core_type = #tpu.core_type<tc>, window_params = [{transform_indices = @transform_0, window_bounds = array<i64: 8, 128>}, {pipeline_mode = #tpu.pipeline_mode<synchronous>, transform_indices = @transform_1, window_bounds = array<i64: 128, 512>}, {pipeline_mode = #tpu.pipeline_mode<synchronous>, transform_indices = @transform_2, window_bounds = array<i64: 1, 512>}, {pipeline_mode = #tpu.pipeline_mode<synchronous>, transform_indices = @transform_3, window_bounds = array<i64: 512, 256>}, {pipeline_mode = #tpu.pipeline_mode<synchronous>, transform_indices = @transform_4, window_bounds = array<i64: 1, 256>}, {pipeline_mode = #tpu.pipeline_mode<synchronous>, transform_indices = @transform_5, window_bounds = array<i64: 256, 128>}, {pipeline_mode = #tpu.pipeline_mode<synchronous>, transform_indices = @transform_6, window_bounds = array<i64: 1, 128>}, {transform_indices = @transform_7, window_bounds = array<i64: 8, 128>}]} {
    %c0 = arith.constant 0 : index
    %c0_0 = arith.constant 0 : index
    %0 = vector.load %arg1[%c0, %c0_0] : memref<8x128xf32, #tpu.memory_space<vmem>>, vector<8x128xf32>
    %1 = arith.truncf %0 : vector<8x128xf32> to vector<8x128xbf16>
    %c0_1 = arith.constant 0 : index
    %c0_2 = arith.constant 0 : index
    %2 = vector.load %arg2[%c0_1, %c0_2] : memref<128x512xbf16, #tpu.memory_space<vmem>>, vector<128x512xbf16>
    %cst = arith.constant dense<0.000000e+00> : vector<8x512xf32>
    %3 = tpu.matmul %1, %2, %cst {dimension_numbers = #tpu.dot_dimension_numbers<[1], [0], [0], [1], [0, 0, 1, 1], [], []>} : vector<8x128xbf16>, vector<128x512xbf16>, vector<8x512xf32> -> vector<8x512xf32>
    %c0_3 = arith.constant 0 : index
    %c0_4 = arith.constant 0 : index
    %4 = vector.load %arg3[%c0_3, %c0_4] : memref<1x512xf32, #tpu.memory_space<vmem>>, vector<1x512xf32>
    %5 = vector.broadcast %4 : vector<1x512xf32> to vector<8x512xf32>
    %6 = arith.addf %3, %5 : vector<8x512xf32>
    %7 = arith.truncf %6 : vector<8x512xf32> to vector<8x512xbf16>
    %cst_5 = arith.constant 0.000000e+00 : bf16
    %8 = vector.broadcast %cst_5 : bf16 to vector<8x512xbf16>
    %9 = arith.maximumf %7, %8 : vector<8x512xbf16>
    %c0_6 = arith.constant 0 : index
    %c0_7 = arith.constant 0 : index
    %10 = vector.load %arg4[%c0_6, %c0_7] : memref<512x256xbf16, #tpu.memory_space<vmem>>, vector<512x256xbf16>
    %cst_8 = arith.constant dense<0.000000e+00> : vector<8x256xf32>
    %11 = tpu.matmul %9, %10, %cst_8 {dimension_numbers = #tpu.dot_dimension_numbers<[1], [0], [0], [1], [0, 0, 1, 1], [], []>} : vector<8x512xbf16>, vector<512x256xbf16>, vector<8x256xf32> -> vector<8x256xf32>
    %c0_9 = arith.constant 0 : index
    %c0_10 = arith.constant 0 : index
    %12 = vector.load %arg5[%c0_9, %c0_10] : memref<1x256xf32, #tpu.memory_space<vmem>>, vector<1x256xf32>
    %13 = vector.broadcast %12 : vector<1x256xf32> to vector<8x256xf32>
    %14 = arith.addf %11, %13 : vector<8x256xf32>
    %15 = arith.truncf %14 : vector<8x256xf32> to vector<8x256xbf16>
    %cst_11 = arith.constant 0.000000e+00 : bf16
    %16 = vector.broadcast %cst_11 : bf16 to vector<8x256xbf16>
    %17 = arith.maximumf %15, %16 : vector<8x256xbf16>
    %c0_12 = arith.constant 0 : index
    %c0_13 = arith.constant 0 : index
    %18 = vector.load %arg6[%c0_12, %c0_13] : memref<256x128xbf16, #tpu.memory_space<vmem>>, vector<256x128xbf16>
    %cst_14 = arith.constant dense<0.000000e+00> : vector<8x128xf32>
    %19 = tpu.matmul %17, %18, %cst_14 {dimension_numbers = #tpu.dot_dimension_numbers<[1], [0], [0], [1], [0, 0, 1, 1], [], []>} : vector<8x256xbf16>, vector<256x128xbf16>, vector<8x128xf32> -> vector<8x128xf32>
    %c0_15 = arith.constant 0 : index
    %c0_16 = arith.constant 0 : index
    %20 = vector.load %arg7[%c0_15, %c0_16] : memref<1x128xf32, #tpu.memory_space<vmem>>, vector<1x128xf32>
    %21 = vector.broadcast %20 : vector<1x128xf32> to vector<8x128xf32>
    %22 = arith.addf %19, %21 : vector<8x128xf32>
    %cst_17 = arith.constant dense<0xFF800000> : vector<8xf32>
    %23 = vector.multi_reduction <maximumf>, %22, %cst_17 [1] : vector<8x128xf32> to vector<8xf32>
    %24 = vector.shape_cast %23 : vector<8xf32> to vector<8x1xf32>
    %25 = vector.broadcast %24 : vector<8x1xf32> to vector<8x128xf32>
    %26 = arith.subf %22, %25 : vector<8x128xf32>
    %27 = math.exp %26 : vector<8x128xf32>
    %cst_18 = arith.constant dense<0.000000e+00> : vector<8xf32>
    %28 = vector.multi_reduction <add>, %27, %cst_18 [1] : vector<8x128xf32> to vector<8xf32>
    %29 = vector.shape_cast %28 : vector<8xf32> to vector<8x1xf32>
    %30 = vector.broadcast %29 : vector<8x1xf32> to vector<8x128xf32>
    %31 = arith.divf %27, %30 : vector<8x128xf32>
    %c0_19 = arith.constant 0 : index
    %c0_20 = arith.constant 0 : index
    %32 = vector.load %arg8[%c0_19, %c0_20] : memref<8x128xf32, #tpu.memory_space<vmem>>, vector<8x128xf32>
    tpu.vector_store %arg8[%c0_19, %c0_20], %31 {strides = array<i32>} : memref<8x128xf32, #tpu.memory_space<vmem>>, vector<8x128xf32>,
    return
  }
  func.func @transform_0(%arg0: i32) -> (i32, i32) {
    %c0_i32 = arith.constant 0 : i32
    %c0_i32_0 = arith.constant 0 : i32
    return %arg0, %c0_i32 : i32, i32
  }
  func.func @transform_1(%arg0: i32) -> (i32, i32) {
    %c0_i32 = arith.constant 0 : i32
    %c0_i32_0 = arith.constant 0 : i32
    %c0_i32_1 = arith.constant 0 : i32
    return %c0_i32, %c0_i32_0 : i32, i32
  }
  func.func @transform_2(%arg0: i32) -> (i32, i32) {
    %c0_i32 = arith.constant 0 : i32
    %c0_i32_0 = arith.constant 0 : i32
    %c0_i32_1 = arith.constant 0 : i32
    return %c0_i32, %c0_i32_0 : i32, i32
  }
  func.func @transform_3(%arg0: i32) -> (i32, i32) {
    %c0_i32 = arith.constant 0 : i32
    %c0_i32_0 = arith.constant 0 : i32
    %c0_i32_1 = arith.constant 0 : i32
    return %c0_i32, %c0_i32_0 : i32, i32
  }
  func.func @transform_4(%arg0: i32) -> (i32, i32) {
    %c0_i32 = arith.constant 0 : i32
    %c0_i32_0 = arith.constant 0 : i32
    %c0_i32_1 = arith.constant 0 : i32
    return %c0_i32, %c0_i32_0 : i32, i32
  }
  func.func @transform_5(%arg0: i32) -> (i32, i32) {
    %c0_i32 = arith.constant 0 : i32
    %c0_i32_0 = arith.constant 0 : i32
    %c0_i32_1 = arith.constant 0 : i32
    return %c0_i32, %c0_i32_0 : i32, i32
  }
  func.func @transform_6(%arg0: i32) -> (i32, i32) {
    %c0_i32 = arith.constant 0 : i32
    %c0_i32_0 = arith.constant 0 : i32
    %c0_i32_1 = arith.constant 0 : i32
    return %c0_i32, %c0_i32_0 : i32, i32
  }
  func.func @transform_7(%arg0: i32) -> (i32, i32) {
    %c0_i32 = arith.constant 0 : i32
    %c0_i32_0 = arith.constant 0 : i32
    return %arg0, %c0_i32 : i32, i32
  }
}

</mosaic_0001>

<bundles_post_ra>
// kernel: tpu_custom_call.1
= control target key start
LH: loop header
LB: loop body
LE: loop exit
PB: predicated region body
PF: predicated region fallthrough
CT: control target
= control target key end

     0   :  { %12 = vsyncpa [#allocation3], 0  ;;  %s1877_s0 = inlined_call_operand.hbm [shape: f32[8,128], index: 0, kind: input, shape index: {}]   ;;  %s1878_s1 = inlined_call_operand.hbm [shape: bf16[128,512], index: 1, kind: input, shape index: {}]   ;;  %s1879_s2 = inlined_call_operand.hbm [shape: f32[1,512], index: 2, kind: input, shape index: {}]   ;;  %s1880_s3 = inlined_call_operand.hbm [shape: bf16[512,256], index: 3, kind: input, shape index: {}]   ;;  %s1881_s4 = inlined_call_operand.vmem [shape: f32[1,256], index: 4, kind: input, shape index: {}]   ;;  %s1882_s5 = inlined_call_operand.hbm [shape: bf16[256,128], index: 5, kind: input, shape index: {}]   ;;  %s1883_s6 = inlined_call_operand.vmem [shape: f32[1,128], index: 6, kind: input, shape index: {}]   ;;  %s1884_s7 = inlined_call_operand.hbm [shape: f32[8,128], index: 7, kind: output, shape index: {}]  }
   0x1   :  { %13 = vsyncpa [#allocation6], 0 }
   0x2   :  { %14 = vsyncpa [#allocation9], 0  ;;  %s31_s26 = sshll.u32 %s1878_s1, 4  ;;  %s32_s26 = int_to_ptr.hbm [resolvable:$true] %s31_s26 }
   0x3   :  { %15 = vsyncpa [#allocation4], 0  ;;  %s1801_s27 = smov [#allocation5]   ;;  %s55_s8 = sshll.u32 %s1880_s3, 4  ;;  %s56_s8 = int_to_ptr.hbm [resolvable:$true] %s55_s8 }
   0x4   :  { %s33_s28 = sshll.u32 %s1801_s27, 4  ;;  %s1802_s9 = smov 256   ;;  %s34_s28 = int_to_ptr.vmem [resolvable:$true] %s33_s28 }
   0x5   :  { %s1803_s10 = smov 16   ;;  %s1804_s11 = smov [#allocation8]  }
   0x6   :  { %39 = dma.hbm_to_vmem [thread:$0]  %s32_s26, 4096, %s34_s28, [#allocation6], %s1802_s9, %s1802_s9, %s1803_s10  }
   0x7   :  { %s57_s12 = sshll.u32 %s1804_s11, 4  ;;  %s1805_s13 = smov 128   ;;  %s58_s12 = int_to_ptr.vmem [resolvable:$true] %s57_s12 }
   0x8   :  { %s1806_s14 = smov 8   ;;  %s21_s16 = sshll.u32 %s1877_s0, 4  ;;  %s22_s16 = int_to_ptr.hbm [resolvable:$true] %s21_s16 }
   0x9   :  { %63 = dma.hbm_to_vmem [thread:$0]  %s56_s8, 8192, %s58_s12, [#allocation9], %s1805_s13, %s1805_s13, %s1806_s14  }
   0xa   :  { %s1807_s17 = smov [#allocation2]   ;;  %s45_s20 = sshll.u32 %s1879_s2, 4  ;;  %s46_s20 = int_to_ptr.hbm [resolvable:$true] %s45_s20 }
   0xb   :  { %s23_s18 = sshll.u32 %s1807_s17, 4  ;;  %s1808_s21 = smov [#allocation7]   ;;  %s24_s18 = int_to_ptr.vmem [resolvable:$true] %s23_s18 }
   0xc   :  { %26 = dma.hbm_to_vmem [thread:$0]  %s22_s16, 128, %s24_s18, [#allocation3]  }
   0xd   :  { %s47_s22 = sshll.u32 %s1808_s21, 4  ;;  %s70_s25 = sshll.u32 %s1882_s5, 4  ;;  %s48_s22 = int_to_ptr.vmem [resolvable:$true] %s47_s22  ;;  %s71_s25 = int_to_ptr.hbm [resolvable:$true] %s70_s25 }
   0xe   :  { %50 = dma.hbm_to_vmem [thread:$0]  %s46_s20, 64, %s48_s22, [#allocation6]  }
   0xf   :  { %s1809_s0 = smov [#allocation10]   ;;  %s1810_s27 = smov 64  }
  0x10   :  { %s72_s26 = sshll.u32 %s1809_s0, 4  ;;  %s1811_s28 = smov 4   ;;  %s73_s26 = int_to_ptr.vmem [resolvable:$true] %s72_s26 }
  0x11   :  { %78 = dma.hbm_to_vmem [thread:$0]  %s71_s25, 2048, %s73_s26, [#allocation9], %s1810_s27, %s1810_s27, %s1811_s28  }
  0x12   :  { %1793 = dma.done.wait [#allocation3], 128  }
  0x13   :  { %1794 = vsyncadd [#allocation3], 4294967168 }
  0x14   :  { %1795 = dma.done.wait [#allocation6], 4160  }
  0x15   :  { %1796 = vsyncadd [#allocation6], 4294963136 }
  0x16   :  { %1797 = dma.done.wait [#allocation9], 10240  }
  0x17   :  { %1798 = vsyncadd [#allocation9], 4294957056  ;;  %v1186_v0 = vld [vmem:[#allocation5 + $0xe0] sm:$0xf]  ;;  %v1550_v1 = vld [vmem:[#allocation5 + $0xec] sm:$0xf0] }
  0x18   :  { %v1548_v2 = vld [vmem:[#allocation5 + $0xe4] sm:$0xf]  ;;  %v1187_v3 = vor.u32 %v1550_v1, %v1186_v0  ;;  %v1188_v4 = vld [vmem:[#allocation5 + $0xf0] sm:$0xf0]  ;;  %v1194_v5 = vld [vmem:[#allocation5 + $0xe8] sm:$0xf] }
  0x19   :  { %v1551_v6 = vld [vmem:[#allocation5 + $0xf4] sm:$0xf0]  ;;  %v1191_v7 = vor.u32 %v1548_v2, %v1188_v4  ;;  %v1549_v9 = vld [vmem:[#allocation5 + $0xec] sm:$0xf]  ;;  %v1196_v10 = vld [vmem:[#allocation5 + $0xf8] sm:$0xf0] }
  0x1a   :  { %v1195_v8 = vor.u32 %v1551_v6, %v1194_v5  ;;  %v1170_v11 = vld [vmem:[#allocation5 + $0xc0] sm:$0xf]  ;;  %305 = vmatpush.bf16.msra.mxu0 %v1187_v3  ;;  %v1199_v12 = vor.u32 %v1549_v9, %v1196_v10  ;;  %v1546_v13 = vld [vmem:[#allocation5 + $0xcc] sm:$0xf0]  ;;  %v1544_v14 = vld [vmem:[#allocation5 + $0xc4] sm:$0xf] }
  0x1b   :  { %v1172_v15 = vld [vmem:[#allocation5 + $0xd0] sm:$0xf0]  ;;  %318 = vmatpush.bf16.msra.mxu1 %v1191_v7  ;;  %v1171_v16 = vor.u32 %v1546_v13, %v1170_v11  ;;  %v1178_v18 = vld [vmem:[#allocation5 + $0xc8] sm:$0xf]  ;;  %v1547_v19 = vld [vmem:[#allocation5 + $0xd4] sm:$0xf0] }
  0x1c   :  { %331 = vmatpush.bf16.msra.mxu2 %v1195_v8  ;;  %v1175_v17 = vor.u32 %v1544_v14, %v1172_v15  ;;  %v1545_v20 = vld [vmem:[#allocation5 + $0xcc] sm:$0xf]  ;;  %344 = vmatpush.bf16.msra.mxu3 %v1199_v12  ;;  %v1179_v21 = vor.u32 %v1547_v19, %v1178_v18  ;;  %v1180_v22 = vld [vmem:[#allocation5 + $0xd8] sm:$0xf0]  ;;  %v1154_v23 = vld [vmem:[#allocation5 + $0xa0] sm:$0xf] }
  0x1d   :  { %v1542_v24 = vld [vmem:[#allocation5 + $0xac] sm:$0xf0]  ;;  %v1183_v25 = vor.u32 %v1545_v20, %v1180_v22  ;;  %v1540_v26 = vld [vmem:[#allocation5 + $0xa4] sm:$0xf]  ;;  %v1156_v27 = vld [vmem:[#allocation5 + $0xb0] sm:$0xf0] }
  0x1e   :  { %v1162_v28 = vld [vmem:[#allocation5 + $0xa8] sm:$0xf]  ;;  %306 = vmatpush.bf16.msra.mxu0 %v1171_v16  ;;  %v1155_v29 = vor.u32 %v1542_v24, %v1154_v23  ;;  %v1543_v30 = vld [vmem:[#allocation5 + $0xb4] sm:$0xf0]  ;;  %v1541_v31 = vld [vmem:[#allocation5 + $0xac] sm:$0xf]  ;;  %v1159_v33 = vor.u32 %v1540_v26, %v1156_v27 }
  0x1f   :  { %v1164_v32 = vld [vmem:[#allocation5 + $0xb8] sm:$0xf0]  ;;  %319 = vmatpush.bf16.msra.mxu1 %v1175_v17  ;;  %v1163_v34 = vor.u32 %v1543_v30, %v1162_v28  ;;  %v1138_v35 = vld [vmem:[#allocation5 + $0x80] sm:$0xf]  ;;  %v1538_v36 = vld [vmem:[#allocation5 + $0x8c] sm:$0xf0] }
  0x20   :  { %332 = vmatpush.bf16.msra.mxu2 %v1179_v21  ;;  %v1536_v37 = vld [vmem:[#allocation5 + $0x84] sm:$0xf]  ;;  %345 = vmatpush.bf16.msra.mxu3 %v1183_v25  ;;  %v1167_v38 = vor.u32 %v1541_v31, %v1164_v32  ;;  %v1140_v39 = vld [vmem:[#allocation5 + $0x90] sm:$0xf0]  ;;  %v1146_v40 = vld [vmem:[#allocation5 + $0x88] sm:$0xf]  ;;  %v1139_v44 = vor.u32 %v1538_v36, %v1138_v35 }
  0x21   :  { %v1539_v41 = vld [vmem:[#allocation5 + $0x94] sm:$0xf0]  ;;  %v1537_v42 = vld [vmem:[#allocation5 + $0x8c] sm:$0xf]  ;;  %v1148_v43 = vld [vmem:[#allocation5 + $0x98] sm:$0xf0]  ;;  %v1143_v45 = vor.u32 %v1536_v37, %v1140_v39 }
  0x22   :  { %307 = vmatpush.bf16.msra.mxu0 %v1155_v29  ;;  %v1147_v46 = vor.u32 %v1539_v41, %v1146_v40  ;;  %v1122_v47 = vld [vmem:[#allocation5 + $0x60] sm:$0xf]  ;;  %v1534_v48 = vld [vmem:[#allocation5 + $0x6c] sm:$0xf0]  ;;  %v1532_v49 = vld [vmem:[#allocation5 + $0x64] sm:$0xf]  ;;  %v1151_v50 = vor.u32 %v1537_v42, %v1148_v43 }
  0x23   :  { %320 = vmatpush.bf16.msra.mxu1 %v1159_v33  ;;  %v1124_v51 = vld [vmem:[#allocation5 + $0x70] sm:$0xf0]  ;;  %v1130_v52 = vld [vmem:[#allocation5 + $0x68] sm:$0xf]  ;;  %v1535_v53 = vld [vmem:[#allocation5 + $0x74] sm:$0xf0]  ;;  %v1123_v56 = vor.u32 %v1534_v48, %v1122_v47 }
  0x24   :  { %333 = vmatpush.bf16.msra.mxu2 %v1163_v34  ;;  %346 = vmatpush.bf16.msra.mxu3 %v1167_v38  ;;  %v1533_v54 = vld [vmem:[#allocation5 + $0x6c] sm:$0xf]  ;;  %v1132_v55 = vld [vmem:[#allocation5 + $0x78] sm:$0xf0]  ;;  %v1127_v57 = vor.u32 %v1532_v49, %v1124_v51  ;;  %v1131_v58 = vor.u32 %v1535_v53, %v1130_v52  ;;  %v1106_v59 = vld [vmem:[#allocation5 + $0x40] sm:$0xf] }
  0x25   :  { %v1530_v60 = vld [vmem:[#allocation5 + $0x4c] sm:$0xf0]  ;;  %v1528_v61 = vld [vmem:[#allocation5 + $0x44] sm:$0xf]  ;;  %v1135_v62 = vor.u32 %v1533_v54, %v1132_v55  ;;  %v1108_v63 = vld [vmem:[#allocation5 + $0x50] sm:$0xf0] }
  0x26   :  { %308 = vmatpush.bf16.msra.mxu0 %v1139_v44  ;;  %v1114_v0 = vld [vmem:[#allocation5 + $0x48] sm:$0xf]  ;;  %v1531_v1 = vld [vmem:[#allocation5 + $0x54] sm:$0xf0]  ;;  %v1529_v2 = vld [vmem:[#allocation5 + $0x4c] sm:$0xf]  ;;  %v1107_v4 = vor.u32 %v1530_v60, %v1106_v59  ;;  %v1111_v5 = vor.u32 %v1528_v61, %v1108_v63 }
  0x27   :  { %321 = vmatpush.bf16.msra.mxu1 %v1143_v45  ;;  %v1116_v3 = vld [vmem:[#allocation5 + $0x58] sm:$0xf0]  ;;  %v1115_v6 = vor.u32 %v1531_v1, %v1114_v0  ;;  %v1090_v7 = vld [vmem:[#allocation5 + $0x20] sm:$0xf]  ;;  %v1526_v8 = vld [vmem:[#allocation5 + $0x2c] sm:$0xf0] }
  0x28   :  { %334 = vmatpush.bf16.msra.mxu2 %v1147_v46  ;;  %347 = vmatpush.bf16.msra.mxu3 %v1151_v50  ;;  %v1524_v9 = vld [vmem:[#allocation5 + $0x24] sm:$0xf]  ;;  %v1119_v10 = vor.u32 %v1529_v2, %v1116_v3  ;;  %v1092_v11 = vld [vmem:[#allocation5 + $0x30] sm:$0xf0]  ;;  %v1098_v12 = vld [vmem:[#allocation5 + $0x28] sm:$0xf]  ;;  %v1091_v16 = vor.u32 %v1526_v8, %v1090_v7 }
  0x29   :  { %v1527_v13 = vld [vmem:[#allocation5 + $0x34] sm:$0xf0]  ;;  %v1525_v14 = vld [vmem:[#allocation5 + $0x2c] sm:$0xf]  ;;  %v1100_v15 = vld [vmem:[#allocation5 + $0x38] sm:$0xf0]  ;;  %v1095_v18 = vor.u32 %v1524_v9, %v1092_v11 }
  0x2a   :  { %309 = vmatpush.bf16.msra.mxu0 %v1123_v56  ;;  %v1074_v17 = vld [vmem:[#allocation5] sm:$0xf]  ;;  %v1099_v19 = vor.u32 %v1527_v13, %v1098_v12  ;;  %v1522_v20 = vld [vmem:[#allocation5 + $0xc] sm:$0xf0]  ;;  %v1520_v21 = vld [vmem:[#allocation5 + $0x4] sm:$0xf]  ;;  %v1103_v23 = vor.u32 %v1525_v14, %v1100_v15 }
  0x2b   :  { %322 = vmatpush.bf16.msra.mxu1 %v1127_v57  ;;  %v1076_v22 = vld [vmem:[#allocation5 + $0x10] sm:$0xf0]  ;;  %v1082_v24 = vld [vmem:[#allocation5 + $0x8] sm:$0xf]  ;;  %v1523_v25 = vld [vmem:[#allocation5 + $0x14] sm:$0xf0]  ;;  %v1075_v30 = vor.u32 %v1522_v20, %v1074_v17 }
  0x2c   :  { %335 = vmatpush.bf16.msra.mxu2 %v1131_v58  ;;  %348 = vmatpush.bf16.msra.mxu3 %v1135_v62  ;;  %v1521_v26 = vld [vmem:[#allocation5 + $0xc] sm:$0xf]  ;;  %v1084_v27 = vld [vmem:[#allocation5 + $0x18] sm:$0xf0]  ;;  %v1258_v28 = vld [vmem:[#allocation8 + $0x70] sm:$0xf]  ;;  %v1079_v34 = vor.u32 %v1520_v21, %v1076_v22  ;;  %v1083_v35 = vor.u32 %v1523_v25, %v1082_v24 }
  0x2d   :  { %v1567_v29 = vld [vmem:[#allocation8 + $0x74] sm:$0xf0]  ;;  %v1322_v32 = vld [vmem:[#allocation8 + $0xf0] sm:$0xf]  ;;  %v1087_v36 = vor.u32 %v1521_v26, %v1084_v27  ;;  %v1250_v38 = vld [vmem:[#allocation8 + $0x60] sm:$0xf] }
  0x2e   :  { %310 = vmatpush.bf16.msra.mxu0 %v1107_v4  ;;  %v101_v31 = vld [vmem:[#allocation2] sm:$0xff]  ;;  %v1259_v37 = vor.u32 %v1567_v29, %v1258_v28  ;;  %v1386_v39 = vld [vmem:[#allocation8 + $0x170] sm:$0xf]  ;;  %v1565_v43 = vld [vmem:[#allocation8 + $0x64] sm:$0xf0]  ;;  %s1060_s10 = sshll.u32 %s1884_s7, 4  ;;  %s1061_s10 = int_to_ptr.hbm [resolvable:$true] %s1060_s10 }
  0x2f   :  { %323 = vmatpush.bf16.msra.mxu1 %v1111_v5  ;;  %v1583_v33 = vld [vmem:[#allocation8 + $0xf4] sm:$0xf0]  ;;  %v102_v41 = vpack.c.bf16 %v101_v31, %v101_v31  ;;  %v1450_v44 = vld [vmem:[#allocation8 + $0x1f0] sm:$0xf]  ;;  %v1314_v46 = vld [vmem:[#allocation8 + $0xe0] sm:$0xf]  ;;  %v1251_v49 = vor.u32 %v1565_v43, %v1250_v38 }
  0x30   :  { %336 = vmatpush.bf16.msra.mxu2 %v1115_v6  ;;  %349 = vmatpush.bf16.msra.mxu3 %v1119_v10  ;;  %v1599_v40 = vld [vmem:[#allocation8 + $0x174] sm:$0xf0]  ;;  %v1323_v42 = vor.u32 %v1583_v33, %v1322_v32  ;;  %v1581_v47 = vld [vmem:[#allocation8 + $0xe4] sm:$0xf0]  ;;  %v1242_v51 = vld [vmem:[#allocation8 + $0x50] sm:$0xf] }
  0x31   :  { %v1615_v45 = vld [vmem:[#allocation8 + $0x1f4] sm:$0xf0]  ;;  %v1387_v48 = vor.u32 %v1599_v40, %v1386_v39  ;;  %v1378_v52 = vld [vmem:[#allocation8 + $0x160] sm:$0xf]  ;;  %v1597_v53 = vld [vmem:[#allocation8 + $0x164] sm:$0xf0]  ;;  %v1315_v54 = vor.u32 %v1581_v47, %v1314_v46 }
  0x32   :  { %311 = vmatpush.bf16.msra.mxu0 %v1091_v16  ;;  %v1451_v50 = vor.u32 %v1615_v45, %v1450_v44  ;;  %v1563_v55 = vld [vmem:[#allocation8 + $0x54] sm:$0xf0]  ;;  %v1442_v56 = vld [vmem:[#allocation8 + $0x1e0] sm:$0xf]  ;;  %v1613_v57 = vld [vmem:[#allocation8 + $0x1e4] sm:$0xf0]  ;;  %v1379_v60 = vor.u32 %v1597_v53, %v1378_v52 }
  0x33   :  { %324 = vmatpush.bf16.msra.mxu1 %v1095_v18  ;;  %v1306_v58 = vld [vmem:[#allocation8 + $0xd0] sm:$0xf]  ;;  %v1579_v59 = vld [vmem:[#allocation8 + $0xd4] sm:$0xf0]  ;;  %v1243_v61 = vor.u32 %v1563_v55, %v1242_v51  ;;  %v1443_v62 = vor.u32 %v1613_v57, %v1442_v56  ;;  %v1234_v63 = vld [vmem:[#allocation8 + $0x40] sm:$0xf] }
  0x34   :  { %337 = vmatpush.bf16.msra.mxu2 %v1099_v19  ;;  %350 = vmatpush.bf16.msra.mxu3 %v1103_v23  ;;  %v1370_v0 = vld [vmem:[#allocation8 + $0x150] sm:$0xf]  ;;  %v1595_v1 = vld [vmem:[#allocation8 + $0x154] sm:$0xf0]  ;;  %v1307_v2 = vor.u32 %v1579_v59, %v1306_v58  ;;  %v1561_v3 = vld [vmem:[#allocation8 + $0x44] sm:$0xf0] }
  0x35   :  { %v1434_v4 = vld [vmem:[#allocation8 + $0x1d0] sm:$0xf]  ;;  %v1611_v5 = vld [vmem:[#allocation8 + $0x1d4] sm:$0xf0]  ;;  %v1298_v6 = vld [vmem:[#allocation8 + $0xc0] sm:$0xf]  ;;  %v1371_v8 = vor.u32 %v1595_v1, %v1370_v0  ;;  %v1235_v9 = vor.u32 %v1561_v3, %v1234_v63 }
  0x36   :  { %312 = vmatpush.bf16.msra.mxu0 %v1075_v30  ;;  %v1577_v7 = vld [vmem:[#allocation8 + $0xc4] sm:$0xf0]  ;;  %v1435_v10 = vor.u32 %v1611_v5, %v1434_v4  ;;  %v1226_v11 = vld [vmem:[#allocation8 + $0x30] sm:$0xf]  ;;  %v1362_v12 = vld [vmem:[#allocation8 + $0x140] sm:$0xf] }
  0x37   :  { %325 = vmatpush.bf16.msra.mxu1 %v1079_v34  ;;  %v1593_v13 = vld [vmem:[#allocation8 + $0x144] sm:$0xf0]  ;;  %v1299_v14 = vor.u32 %v1577_v7, %v1298_v6  ;;  %v1559_v15 = vld [vmem:[#allocation8 + $0x34] sm:$0xf0]  ;;  %v1426_v16 = vld [vmem:[#allocation8 + $0x1c0] sm:$0xf] }
  0x38   :  { %338 = vmatpush.bf16.msra.mxu2 %v1083_v35  ;;  %351 = vmatpush.bf16.msra.mxu3 %v1087_v36  ;;  %v1609_v17 = vld [vmem:[#allocation8 + $0x1c4] sm:$0xf0]  ;;  %v1290_v18 = vld [vmem:[#allocation8 + $0xb0] sm:$0xf]  ;;  %v1575_v19 = vld [vmem:[#allocation8 + $0xb4] sm:$0xf0]  ;;  %v1363_v20 = vor.u32 %v1593_v13, %v1362_v12  ;;  %v1227_v21 = vor.u32 %v1559_v15, %v1226_v11 }
  0x39   :  { %313 = vmatmul.bf16.vlgmr.msra.gmra.mxu0 %v102_v41  ;;  %v1427_v22 = vor.u32 %v1609_v17, %v1426_v16  ;;  %v1218_v23 = vld [vmem:[#allocation8 + $0x20] sm:$0xf]  ;;  %v1354_v24 = vld [vmem:[#allocation8 + $0x130] sm:$0xf]  ;;  %v1591_v25 = vld [vmem:[#allocation8 + $0x134] sm:$0xf0]  ;;  %v1291_v26 = vor.u32 %v1575_v19, %v1290_v18 }
  0x3a   :  { %761 = vmatpush.bf16.msrb.mxu0 %v1259_v37  ;;  %326 = vmatmul.bf16.vlgmr.msra.gmra.mxu1 %v102_v41  ;;  %v1557_v27 = vld [vmem:[#allocation8 + $0x24] sm:$0xf0]  ;;  %v1418_v28 = vld [vmem:[#allocation8 + $0x1b0] sm:$0xf]  ;;  %v1607_v29 = vld [vmem:[#allocation8 + $0x1b4] sm:$0xf0]  ;;  %v1355_v32 = vor.u32 %v1591_v25, %v1354_v24 }
  0x3b   :  { %774 = vmatpush.bf16.msrb.mxu1 %v1323_v42  ;;  %339 = vmatmul.bf16.vlgmr.msra.gmra.mxu2 %v102_v41  ;;  %v1282_v30 = vld [vmem:[#allocation8 + $0xa0] sm:$0xf]  ;;  %v1573_v31 = vld [vmem:[#allocation8 + $0xa4] sm:$0xf0]  ;;  %v1219_v33 = vor.u32 %v1557_v27, %v1218_v23  ;;  %v1419_v34 = vor.u32 %v1607_v29, %v1418_v28  ;;  %v1210_v35 = vld [vmem:[#allocation8 + $0x10] sm:$0xf] }
  0x3c   :  { %352 = vmatmul.bf16.vlgmr.msra.gmra.mxu3 %v102_v41  ;;  %787 = vmatpush.bf16.msrb.mxu2 %v1387_v48  ;;  %v1346_v36 = vld [vmem:[#allocation8 + $0x120] sm:$0xf]  ;;  %v1589_v37 = vld [vmem:[#allocation8 + $0x124] sm:$0xf0]  ;;  %v1283_v38 = vor.u32 %v1573_v31, %v1282_v30  ;;  %v1555_v39 = vld [vmem:[#allocation8 + $0x14] sm:$0xf0] }
  0x3d   :  { %800 = vmatpush.bf16.msrb.mxu3 %v1451_v50  ;;  %v1410_v40 = vld [vmem:[#allocation8 + $0x1a0] sm:$0xf]  ;;  %v1605_v41 = vld [vmem:[#allocation8 + $0x1a4] sm:$0xf0]  ;;  %v1274_v42 = vld [vmem:[#allocation8 + $0x90] sm:$0xf]  ;;  %v1347_v44 = vor.u32 %v1589_v37, %v1346_v36  ;;  %v1211_v46 = vor.u32 %v1555_v39, %v1210_v35 }
  0x3e   :  { %762 = vmatpush.bf16.msrb.mxu0 %v1251_v49  ;;  %v1571_v43 = vld [vmem:[#allocation8 + $0x94] sm:$0xf0]  ;;  %v1202_v45 = vld [vmem:[#allocation8] sm:$0xf]  ;;  %v1411_v47 = vor.u32 %v1605_v41, %v1410_v40  ;;  %v1553_v48 = vld [vmem:[#allocation8 + $0x4] sm:$0xf0] }
  0x3f   :  { %775 = vmatpush.bf16.msrb.mxu1 %v1315_v54  ;;  %v1338_v49 = vld [vmem:[#allocation8 + $0x110] sm:$0xf]  ;;  %v1587_v50 = vld [vmem:[#allocation8 + $0x114] sm:$0xf0]  ;;  %v1275_v51 = vor.u32 %v1571_v43, %v1274_v42  ;;  %v1266_v52 = vld [vmem:[#allocation8 + $0x80] sm:$0xf] }
  0x40   :  { %788 = vmatpush.bf16.msrb.mxu2 %v1379_v60  ;;  %v1402_v53 = vld [vmem:[#allocation8 + $0x190] sm:$0xf]  ;;  %v1603_v54 = vld [vmem:[#allocation8 + $0x194] sm:$0xf0]  ;;  %v1569_v55 = vld [vmem:[#allocation8 + $0x84] sm:$0xf0]  ;;  %v1339_v60 = vor.u32 %v1587_v50, %v1338_v49 }
  0x41   :  { %801 = vmatpush.bf16.msrb.mxu3 %v1443_v62  ;;  %v1566_v56 = vld [vmem:[#allocation8 + $0x74] sm:$0xf]  ;;  %v1260_v57 = vld [vmem:[#allocation8 + $0x78] sm:$0xf0]  ;;  %v1403_v62 = vor.u32 %v1603_v54, %v1402_v53  ;;  %v1564_v63 = vld [vmem:[#allocation8 + $0x64] sm:$0xf]  ;;  %v1267_v3 = vor.u32 %v1569_v55, %v1266_v52 }
  0x42   :  { %763 = vmatpush.bf16.msrb.mxu0 %v1243_v61  ;;  %v1582_v58 = vld [vmem:[#allocation8 + $0xf4] sm:$0xf]  ;;  %v1324_v59 = vld [vmem:[#allocation8 + $0xf8] sm:$0xf0]  ;;  %v1203_v61 = vor.u32 %v1553_v48, %v1202_v45  ;;  %v1330_v0 = vld [vmem:[#allocation8 + $0x100] sm:$0xf]  ;;  %v1263_v4 = vor.u32 %v1566_v56, %v1260_v57 }
  0x43   :  { %776 = vmatpush.bf16.msrb.mxu1 %v1307_v2  ;;  %v1585_v1 = vld [vmem:[#allocation8 + $0x104] sm:$0xf0]  ;;  %v1394_v2 = vld [vmem:[#allocation8 + $0x180] sm:$0xf]  ;;  %v1598_v6 = vld [vmem:[#allocation8 + $0x174] sm:$0xf] }
  0x44   :  { %789 = vmatpush.bf16.msrb.mxu2 %v1371_v8  ;;  %v1601_v5 = vld [vmem:[#allocation8 + $0x184] sm:$0xf0]  ;;  %v1388_v7 = vld [vmem:[#allocation8 + $0x178] sm:$0xf0]  ;;  %v1327_v8 = vor.u32 %v1582_v58, %v1324_v59  ;;  %v1580_v12 = vld [vmem:[#allocation8 + $0xe4] sm:$0xf] }
  0x45   :  { %802 = vmatpush.bf16.msrb.mxu3 %v1435_v10  ;;  %v1614_v10 = vld [vmem:[#allocation8 + $0x1f4] sm:$0xf]  ;;  %v1452_v11 = vld [vmem:[#allocation8 + $0x1f8] sm:$0xf0]  ;;  %v1316_v13 = vld [vmem:[#allocation8 + $0xe8] sm:$0xf0]  ;;  %v1395_v15 = vor.u32 %v1601_v5, %v1394_v2  ;;  %v1391_v16 = vor.u32 %v1598_v6, %v1388_v7 }
  0x46   :  { %764 = vmatpush.bf16.msrb.mxu0 %v1235_v9  ;;  %v1252_v9 = vld [vmem:[#allocation8 + $0x68] sm:$0xf0]  ;;  %v1455_v18 = vor.u32 %v1614_v10, %v1452_v11  ;;  %v1319_v19 = vor.u32 %v1580_v12, %v1316_v13  ;;  %v1308_v24 = vld [vmem:[#allocation8 + $0xd8] sm:$0xf0]  ;;  %v1612_v29 = vld [vmem:[#allocation8 + $0x1e4] sm:$0xf] }
  0x47   :  { %777 = vmatpush.bf16.msrb.mxu1 %v1299_v14  ;;  %v1331_v14 = vor.u32 %v1585_v1, %v1330_v0  ;;  %v1255_v17 = vor.u32 %v1564_v63, %v1252_v9  ;;  %v1380_v27 = vld [vmem:[#allocation8 + $0x168] sm:$0xf0]  ;;  %v1372_v39 = vld [vmem:[#allocation8 + $0x158] sm:$0xf0]  ;;  %v1610_v40 = vld [vmem:[#allocation8 + $0x1d4] sm:$0xf] }
  0x48   :  { %790 = vmatpush.bf16.msrb.mxu2 %v1363_v20  ;;  %v1562_v20 = vld [vmem:[#allocation8 + $0x54] sm:$0xf]  ;;  %v1444_v30 = vld [vmem:[#allocation8 + $0x1e8] sm:$0xf0]  ;;  %v1436_v42 = vld [vmem:[#allocation8 + $0x1d8] sm:$0xf0] }
  0x49   :  { %803 = vmatpush.bf16.msrb.mxu3 %v1427_v22  ;;  %v1578_v22 = vld [vmem:[#allocation8 + $0xd4] sm:$0xf]  ;;  %v1447_v31 = vor.u32 %v1612_v29, %v1444_v30  ;;  %v1300_v36 = vld [vmem:[#allocation8 + $0xc8] sm:$0xf0]  ;;  %v1439_v43 = vor.u32 %v1610_v40, %v1436_v42  ;;  %v1228_v45 = vld [vmem:[#allocation8 + $0x38] sm:$0xf0] }
  0x4a   :  { %765 = vmatpush.bf16.msrb.mxu0 %v1227_v21  ;;  %v1244_v21 = vld [vmem:[#allocation8 + $0x58] sm:$0xf0]  ;;  %v1311_v25 = vor.u32 %v1578_v22, %v1308_v24  ;;  %v1592_v50 = vld [vmem:[#allocation8 + $0x144] sm:$0xf]  ;;  %v1428_v54 = vld [vmem:[#allocation8 + $0x1c8] sm:$0xf0] }
  0x4b   :  { %778 = vmatpush.bf16.msrb.mxu1 %v1291_v26  ;;  %v1247_v23 = vor.u32 %v1562_v20, %v1244_v21  ;;  %v1596_v26 = vld [vmem:[#allocation8 + $0x164] sm:$0xf]  ;;  %v1292_v48 = vld [vmem:[#allocation8 + $0xb8] sm:$0xf0]  ;;  %v1220_v57 = vld [vmem:[#allocation8 + $0x28] sm:$0xf0] }
  0x4c   :  { %791 = vmatpush.bf16.msrb.mxu2 %v1355_v32  ;;  %v1383_v28 = vor.u32 %v1596_v26, %v1380_v27  ;;  %v1560_v32 = vld [vmem:[#allocation8 + $0x44] sm:$0xf]  ;;  %v1356_v63 = vld [vmem:[#allocation8 + $0x138] sm:$0xf0]  ;;  %v1606_v0 = vld [vmem:[#allocation8 + $0x1b4] sm:$0xf] }
  0x4d   :  { %804 = vmatpush.bf16.msrb.mxu3 %v1419_v34  ;;  %v1576_v34 = vld [vmem:[#allocation8 + $0xc4] sm:$0xf]  ;;  %v1420_v2 = vld [vmem:[#allocation8 + $0x1b8] sm:$0xf0]  ;;  %v1570_v6 = vld [vmem:[#allocation8 + $0x94] sm:$0xf] }
  0x4e   :  { %766 = vmatpush.bf16.msrb.mxu0 %v1219_v33  ;;  %v1236_v33 = vld [vmem:[#allocation8 + $0x48] sm:$0xf0]  ;;  %v1303_v37 = vor.u32 %v1576_v34, %v1300_v36  ;;  %v1608_v52 = vld [vmem:[#allocation8 + $0x1c4] sm:$0xf]  ;;  %v1212_v5 = vld [vmem:[#allocation8 + $0x18] sm:$0xf0] }
  0x4f   :  { %779 = vmatpush.bf16.msrb.mxu1 %v1283_v38  ;;  %v1239_v35 = vor.u32 %v1560_v32, %v1236_v33  ;;  %v1594_v38 = vld [vmem:[#allocation8 + $0x154] sm:$0xf]  ;;  %v1431_v55 = vor.u32 %v1608_v52, %v1428_v54  ;;  %v1556_v56 = vld [vmem:[#allocation8 + $0x24] sm:$0xf]  ;;  %v1348_v10 = vld [vmem:[#allocation8 + $0x128] sm:$0xf0] }
  0x50   :  { %792 = vmatpush.bf16.msrb.mxu2 %v1347_v44  ;;  %v1375_v41 = vor.u32 %v1594_v38, %v1372_v39  ;;  %v1558_v44 = vld [vmem:[#allocation8 + $0x34] sm:$0xf]  ;;  %v1572_v58 = vld [vmem:[#allocation8 + $0xa4] sm:$0xf]  ;;  %v1223_v59 = vor.u32 %v1556_v56, %v1220_v57  ;;  %v1404_v26 = vld [vmem:[#allocation8 + $0x198] sm:$0xf0] }
  0x51   :  { %805 = vmatpush.bf16.msrb.mxu3 %v1411_v47  ;;  %v1574_v47 = vld [vmem:[#allocation8 + $0xb4] sm:$0xf]  ;;  %v1588_v9 = vld [vmem:[#allocation8 + $0x124] sm:$0xf]  ;;  %v1332_v29 = vld [vmem:[#allocation8 + $0x108] sm:$0xf0] }
  0x52   :  { %767 = vmatpush.bf16.msrb.mxu0 %v1211_v46  ;;  %v1231_v46 = vor.u32 %v1558_v44, %v1228_v45  ;;  %v1295_v49 = vor.u32 %v1574_v47, %v1292_v48  ;;  %v1351_v12 = vor.u32 %v1588_v9, %v1348_v10  ;;  %v1604_v13 = vld [vmem:[#allocation8 + $0x1a4] sm:$0xf]  ;;  %v1586_v22 = vld [vmem:[#allocation8 + $0x114] sm:$0xf]  ;;  %v1396_v32 = vld [vmem:[#allocation8 + $0x188] sm:$0xf0] }
  0x53   :  { %780 = vmatpush.bf16.msrb.mxu1 %v1275_v51  ;;  %v1364_v51 = vld [vmem:[#allocation8 + $0x148] sm:$0xf0]  ;;  %v1602_v24 = vld [vmem:[#allocation8 + $0x194] sm:$0xf]  ;;  %v1600_v30 = vld [vmem:[#allocation8 + $0x184] sm:$0xf] }
  0x54   :  { %793 = vmatpush.bf16.msrb.mxu2 %v1339_v60  ;;  %v1367_v53 = vor.u32 %v1592_v50, %v1364_v51  ;;  %v1284_v60 = vld [vmem:[#allocation8 + $0xa8] sm:$0xf0]  ;;  %v1407_v27 = vor.u32 %v1602_v24, %v1404_v26  ;;  %v135_v33 = vld [vmem:[#allocation7] sm:$0xf]  ;;  %v1399_v34 = vor.u32 %v1600_v30, %v1396_v32  ;;  %v1622_v52 = vld [vmem:[#allocation10 + $0x30] sm:$0xff] }
  0x55   :  { %806 = vmatpush.bf16.msrb.mxu3 %v1403_v62  ;;  %v1590_v62 = vld [vmem:[#allocation8 + $0x134] sm:$0xf]  ;;  %v138_v36 = vperm.slane %v135_v33, 1  ;;  %v1623_v44 = vld [vmem:[#allocation10 + $0x38] sm:$0xff]  ;;  %v1625_v9 = vld [vmem:[#allocation10 + $0x48] sm:$0xff] }
  0x56   :  { %768 = vmatpush.bf16.msrb.mxu0 %v1203_v61  ;;  %v1287_v61 = vor.u32 %v1572_v58, %v1284_v60  ;;  %v1359_v1 = vor.u32 %v1590_v62, %v1356_v63  ;;  %v1621_v58 = vld [vmem:[#allocation10 + $0x28] sm:$0xff]  ;;  %v1620_v62 = vld [vmem:[#allocation10 + $0x20] sm:$0xff]  ;;  %v1631_v63 = vld [vmem:[#allocation10 + $0x78] sm:$0xff] }
  0x57   :  { %781 = vmatpush.bf16.msrb.mxu1 %v1267_v3  ;;  %v1423_v3 = vor.u32 %v1606_v0, %v1420_v2  ;;  %v1619_v0 = vld [vmem:[#allocation10 + $0x18] sm:$0xff]  ;;  %v1630_v2 = vld [vmem:[#allocation10 + $0x70] sm:$0xff] }
  0x58   :  { %794 = vmatpush.bf16.msrb.mxu2 %v1331_v14  ;;  %v1412_v14 = vld [vmem:[#allocation8 + $0x1a8] sm:$0xf0]  ;;  %v435_v10 = vld [vmem:[%s1881_s4] sm:$0x3] }
  0x59   :  { %807 = vmatpush.bf16.msrb.mxu3 %v1395_v15  ;;  %v1552_v15 = vld [vmem:[#allocation8 + $0x4] sm:$0xf] }
  0x5a   :  { %813 = vmatpush.bf16.msra.mxu0 %v1263_v4  ;;  %v1554_v4 = vld [vmem:[#allocation8 + $0x14] sm:$0xf] }
  0x5b   :  { %826 = vmatpush.bf16.msra.mxu1 %v1327_v8  ;;  %v1215_v7 = vor.u32 %v1554_v4, %v1212_v5  ;;  %v1276_v8 = vld [vmem:[#allocation8 + $0x98] sm:$0xf0]  ;;  %v1629_v4 = vld [vmem:[#allocation10 + $0x68] sm:$0xff]  ;;  %v1616_v5 = vld [vmem:[#allocation10] sm:$0xff] }
  0x5c   :  { %839 = vmatpush.bf16.msra.mxu2 %v1391_v16  ;;  %v1279_v11 = vor.u32 %v1570_v6, %v1276_v8  ;;  %v1415_v16 = vor.u32 %v1604_v13, %v1412_v14  ;;  %v1628_v6 = vld [vmem:[#allocation10 + $0x60] sm:$0xff]  ;;  %v1626_v8 = vld [vmem:[#allocation10 + $0x50] sm:$0xff]  ;;  %v437_v13 = vperm.slane %v435_v10, 0 }
  0x5d   :  { %852 = vmatpush.bf16.msra.mxu3 %v1455_v18  ;;  %v1568_v18 = vld [vmem:[#allocation8 + $0x84] sm:$0xf] }
  0x5e   :  { %814 = vmatpush.bf16.msra.mxu0 %v1255_v17  ;;  %v1204_v17 = vld [vmem:[#allocation8 + $0x8] sm:$0xf0]  ;;  %v1624_v14 = vld [vmem:[#allocation10 + $0x40] sm:$0xff] }
  0x5f   :  { %827 = vmatpush.bf16.msra.mxu1 %v1319_v19  ;;  %v1268_v19 = vld [vmem:[#allocation8 + $0x88] sm:$0xf0]  ;;  %v1207_v20 = vor.u32 %v1552_v15, %v1204_v17 }
  0x60   :  { %840 = vmatpush.bf16.msra.mxu2 %v1383_v28  ;;  %v1271_v21 = vor.u32 %v1568_v18, %v1268_v19  ;;  %v1584_v28 = vld [vmem:[#allocation8 + $0x104] sm:$0xf] }
  0x61   :  { %853 = vmatpush.bf16.msra.mxu3 %v1447_v31  ;;  %v1335_v31 = vor.u32 %v1584_v28, %v1332_v29 }
  0x62   :  { %815 = vmatpush.bf16.msra.mxu0 %v1247_v23  ;;  %v1340_v23 = vld [vmem:[#allocation8 + $0x118] sm:$0xf0] }
  0x63   :  { %828 = vmatpush.bf16.msra.mxu1 %v1311_v25  ;;  %v1343_v25 = vor.u32 %v1586_v22, %v1340_v23 }
  0x64   :  { %841 = vmatpush.bf16.msra.mxu2 %v1375_v41 }
  0x65   :  { %854 = vmatpush.bf16.msra.mxu3 %v1439_v43  ;;  %v139_v43 = vperm.slane %v135_v33, 2 }
  0x66   :  { %816 = vmatpush.bf16.msra.mxu0 %v1239_v35  ;;  %v137_v35 = vperm.slane %v135_v33, 0 }
  0x67   :  { %829 = vmatpush.bf16.msra.mxu1 %v1303_v37 }
  0x68   :  { %842 = vmatpush.bf16.msra.mxu2 %v1367_v53 }
  0x69   :  { %855 = vmatpush.bf16.msra.mxu3 %v1431_v55 }
  0x6a   :  { %817 = vmatpush.bf16.msra.mxu0 %v1231_v46  ;;  %v140_v46 = vperm.slane %v135_v33, 3 }
  0x6b   :  { %830 = vmatpush.bf16.msra.mxu1 %v1295_v49 }
  0x6c   :  { %843 = vmatpush.bf16.msra.mxu2 %v1359_v1  ;;  %v1618_v1 = vld [vmem:[#allocation10 + $0x10] sm:$0xff] }
  0x6d   :  { %856 = vmatpush.bf16.msra.mxu3 %v1423_v3  ;;  %v1617_v3 = vld [vmem:[#allocation10 + $0x8] sm:$0xff] }
  0x6e   :  { %818 = vmatpush.bf16.msra.mxu0 %v1223_v59 }
  0x6f   :  { %831 = vmatpush.bf16.msra.mxu1 %v1287_v61 }
  0x70   :  { %844 = vmatpush.bf16.msra.mxu2 %v1351_v12 }
  0x71   :  { %857 = vmatpush.bf16.msra.mxu3 %v1415_v16 }
  0x72   :  { %819 = vmatpush.bf16.msra.mxu0 %v1215_v7  ;;  %v1627_v7 = vld [vmem:[#allocation10 + $0x58] sm:$0xff] }
  0x73   :  { %832 = vmatpush.bf16.msra.mxu1 %v1279_v11 }
  0x74   :  { %845 = vmatpush.bf16.msra.mxu2 %v1343_v25 }
  0x75   :  { %858 = vmatpush.bf16.msra.mxu3 %v1407_v27  ;;  %v438_v27 = vperm.slane %v435_v10, 1 }
  0x76   :  { %820 = vmatpush.bf16.msra.mxu0 %v1207_v20 }
  0x77   :  { %833 = vmatpush.bf16.msra.mxu1 %v1271_v21 }
  0x78   :  { %846 = vmatpush.bf16.msra.mxu2 %v1335_v31 }
  0x79   :  { %859 = vmatpush.bf16.msra.mxu3 %v1399_v34 }
  0xb6   :  { %v314_v37 = vpop.f32.mrf.mxu0 }
  0xb7   :  { %v315_v38 = vadd.f32 %v314_v37, %v137_v35  ;;  %v327_v39 = vpop.f32.mrf.mxu1 }
  0xb8   :  { %v328_v40 = vadd.f32 %v327_v39, %v138_v36 }
  0xb9   :  { %v363_v41 = vmax.f32 %v315_v38, 0.0 }
  0xba   :  { %v364_v42 = vmax.f32 %v328_v40, 0.0 }
  0xbb   :  { %v367_v45 = vpack.c.bf16 %v363_v41, %v363_v41 }
  0xbc   :  { %v368_v47 = vpack.c.bf16 %v364_v42, %v364_v42 }
  0xbd   :  { %769 = vmatmul.bf16.vlgmr.msrb.gmra.mxu0 %v367_v45 }
  0xbe   :  { %v340_v48 = vpop.f32.mrf.mxu2  ;;  %782 = vmatmul.bf16.vlgmr.msrb.gmra.mxu1 %v368_v47  ;;  %v316_v51 = vpop.f32.mrf.mxu0  ;;  %1004 = vmatpush.bf16.msrb.mxu0 %v1623_v44  ;;  %v1644_v44 = vld [vmem:[%s1883_s6] ss:$0 sm:$0xff]  ;;  %s1812_s6 = smov [#allocation11]  }
  0xbf   :  { %v341_v49 = vadd.f32 %v340_v48, %v139_v43  ;;  %v353_v50 = vpop.f32.mrf.mxu3  ;;  %v329_v54 = vpop.f32.mrf.mxu1  ;;  %1017 = vmatpush.bf16.msrb.mxu1 %v1631_v63  ;;  %s1058_s30 = sshll.u32 %s1812_s6, 4  ;;  %s1059_s30 = int_to_ptr.vmem [resolvable:$true] %s1058_s30 }
  0xc0   :  { %v354_v53 = vadd.f32 %v353_v50, %v140_v46 }
  0xc1   :  { %v365_v55 = vmax.f32 %v341_v49, 0.0 }
  0xc2   :  { %v366_v56 = vmax.f32 %v354_v53, 0.0  ;;  %1005 = vmatpush.bf16.msrb.mxu0 %v1622_v52 }
  0xc3   :  { %v369_v57 = vpack.c.bf16 %v365_v55, %v365_v55  ;;  %1018 = vmatpush.bf16.msrb.mxu1 %v1630_v2 }
  0xc4   :  { %v370_v59 = vpack.c.bf16 %v366_v56, %v366_v56 }
  0xc5   :  { %795 = vmatmul.bf16.vlgmr.msrb.gmra.mxu2 %v369_v57 }
  0xc6   :  { %808 = vmatmul.bf16.vlgmr.msrb.gmra.mxu3 %v370_v59  ;;  %v342_v60 = vpop.f32.mrf.mxu2  ;;  %1006 = vmatpush.bf16.msrb.mxu0 %v1621_v58 }
  0xc7   :  { %v355_v61 = vpop.f32.mrf.mxu3  ;;  %1019 = vmatpush.bf16.msrb.mxu1 %v1629_v4 }
  0xca   :  { %1007 = vmatpush.bf16.msrb.mxu0 %v1620_v62 }
  0xcb   :  { %1020 = vmatpush.bf16.msrb.mxu1 %v1628_v6 }
  0xcd   :  { %821 = vmatmul.bf16.vlgmr.msra.gmra.mxu0 %v367_v45 }
  0xce   :  { %834 = vmatmul.bf16.vlgmr.msra.gmra.mxu1 %v368_v47  ;;  %1008 = vmatpush.bf16.msrb.mxu0 %v1619_v0 }
  0xcf   :  { %1021 = vmatpush.bf16.msrb.mxu1 %v1627_v7 }
  0xd2   :  { %1009 = vmatpush.bf16.msrb.mxu0 %v1618_v1 }
  0xd3   :  { %1022 = vmatpush.bf16.msrb.mxu1 %v1626_v8 }
  0xd5   :  { %847 = vmatmul.bf16.vlgmr.msra.gmra.mxu2 %v369_v57 }
  0xd6   :  { %860 = vmatmul.bf16.vlgmr.msra.gmra.mxu3 %v370_v59  ;;  %1010 = vmatpush.bf16.msrb.mxu0 %v1617_v3 }
  0xd7   :  { %1023 = vmatpush.bf16.msrb.mxu1 %v1625_v9 }
  0xda   :  { %1011 = vmatpush.bf16.msrb.mxu0 %v1616_v5 }
  0xdb   :  { %1024 = vmatpush.bf16.msrb.mxu1 %v1624_v14 }
 0x13a   :  { %v770_v11 = vpop.f32.mrf.mxu0 }
 0x13b   :  { %v783_v12 = vpop.f32.mrf.mxu1  ;;  %v771_v15 = vadd.f32 %v770_v11, %v437_v13 }
 0x13d   :  { %v784_v18 = vadd.f32 %v783_v12, %v771_v15 }
 0x142   :  { %v772_v16 = vpop.f32.mrf.mxu0 }
 0x143   :  { %v785_v17 = vpop.f32.mrf.mxu1 }
 0x148   :  { %v796_v19 = vpop.f32.mrf.mxu2 }
 0x149   :  { %v797_v20 = vadd.f32 %v796_v19, %v784_v18  ;;  %v809_v21 = vpop.f32.mrf.mxu3 }
 0x14a   :  { %v822_v23 = vpop.f32.mrf.mxu0 }
 0x14b   :  { %v810_v22 = vadd.f32 %v809_v21, %v797_v20  ;;  %v835_v24 = vpop.f32.mrf.mxu1  ;;  %v823_v30 = vadd.f32 %v822_v23, %v438_v27 }
 0x14d   :  { %v868_v25 = vmax.f32 %v810_v22, 0.0  ;;  %v836_v33 = vadd.f32 %v835_v24, %v823_v30 }
 0x14f   :  { %v870_v26 = vpack.c.bf16 %v868_v25, %v868_v25 }
 0x150   :  { %v798_v28 = vpop.f32.mrf.mxu2 }
 0x151   :  { %v811_v29 = vpop.f32.mrf.mxu3  ;;  %1012 = vmatmul.bf16.vlgmr.msrb.gmra.mxu0 %v870_v26 }
 0x152   :  { %v824_v31 = vpop.f32.mrf.mxu0 }
 0x153   :  { %v837_v32 = vpop.f32.mrf.mxu1 }
 0x158   :  { %v848_v34 = vpop.f32.mrf.mxu2 }
 0x159   :  { %v849_v35 = vadd.f32 %v848_v34, %v836_v33  ;;  %v861_v36 = vpop.f32.mrf.mxu3 }
 0x15b   :  { %v862_v37 = vadd.f32 %v861_v36, %v849_v35 }
 0x15d   :  { %v869_v38 = vmax.f32 %v862_v37, 0.0 }
 0x15f   :  { %v871_v39 = vpack.c.bf16 %v869_v38, %v869_v38 }
 0x160   :  { %v850_v40 = vpop.f32.mrf.mxu2 }
 0x161   :  { %v863_v41 = vpop.f32.mrf.mxu3  ;;  %1025 = vmatmul.bf16.vlgmr.msrb.gmra.mxu1 %v871_v39 }
 0x1ce   :  { %v1013_v42 = vpop.f32.mrf.mxu0 }
 0x1cf   :  { %v1014_v45 = vadd.f32 %v1644_v44, %v1013_v42 }
 0x1d6   :  { %v1015_v43 = vpop.f32.mrf.mxu0 }
 0x1de   :  { %v1026_v46 = vpop.f32.mrf.mxu1 }
 0x1df   :  { %v1027_v47 = vadd.f32 %v1026_v46, %v1014_v45 }
 0x1e1   :  { %1030 = vmax.xlane.f32.xlu0 %v1027_v47 }
 0x1e6   :  { %v1028_v48 = vpop.f32.mrf.mxu1 }
 0x254   :  { %v1031_v49 = vpop.xlane.xlu0 %1030 }
 0x255   :  { %v1032_v50 = vsub.f32 %v1027_v47, %v1031_v49 }
 0x257   :  { %v1033_v51 = vmul.f32 1.442695, %v1032_v50 }
 0x259   :  { %1645 = vpow2.f32 %v1033_v51 }
 0x25f   :  { %v1646_v52 = vpop.eup %1645 }
 0x260   :  { %1035 = vadd.xlane.f32.xlu0 %v1646_v52 }
 0x2d3   :  { %v1036_v53 = vpop.xlane.xlu0 %1035 }
 0x2d4   :  { %1647 = vrcp.f32 %v1036_v53  ;;  %v1048_v57 = vand.u32 2147483648, %v1036_v53  ;;  %v1046_v59 = vand.u32 2147483647, %v1036_v53  ;;  %vm1042_vm1 = vweird.f32 %v1036_v53 }
 0x2d6   :  { %v1049_v61 = vor.u32 1.1754944e-38, %v1048_v57  ;;  %vm1047_vm3 = vcmp.eq.f32.partialorder %v1046_v59, 8.507059e+37 }
 0x2da   :  { %v1648_v54 = vpop.eup %1647 }
 0x2db   :  { %v1038_v55 = vmul.f32 %v1648_v54, %v1036_v53  ;;  %vm1043_vm0 = vweird.f32 %v1648_v54 }
 0x2dc   :  { %vm1044_vm2 = vmor %vm1042_vm1, %vm1043_vm0 }
 0x2dd   :  { %v1039_v56 = vsub.f32 1.0, %v1038_v55 }
 0x2df   :  { %v1040_v58 = vmul.f32 %v1648_v54, %v1039_v56 }
 0x2e1   :  { %v1041_v60 = vadd.f32 %v1648_v54, %v1040_v58 }
 0x2e3   :  { %v1045_v62 = vsel %vm1044_vm2, %v1648_v54, %v1041_v60 }
 0x2e4   :  { %v1050_v63 = vsel %vm1047_vm3, %v1049_v61, %v1045_v62 }
 0x2e5   :  { %v1051_v0 = vmul.f32 %v1646_v52, %v1050_v63 }
 0x2e7   :  { %1052 = vst [vmem:[#allocation11] sm:$0xff] %v1051_v0 }
 0x2e8   :  { %1063 = dma.vmem_to_hbm [thread:$0]  %s1059_s30, 128, %s1061_s10, [#allocation4]  }
 0x2e9   :  { %1799 = dma.done.wait [#allocation4], 128  }
 0x2ea   :  { %1800 = vsyncadd [#allocation4], 4294967168 }
 0x2eb   :  { %1068 = vsyncpa [#allocation3], 1 }
 0x2ec   :  { %1069 = vsyncpa [#allocation6], 1 }
 0x2ed   :  { %1070 = vsyncpa [#allocation9], 1 }
 0x2ee   :  { %1071 = vsyncpa [#allocation4], 1 }

</bundles_post_ra>
